<compile_context>
chip_gen: v5e
topology: v5e:2x2
jax: 0.10.0
libtpu: 0.0.40
codegen_flags: <defaults>
</compile_context>

<pallas_src>
import math
from functools import partial

import jax
import jax.numpy as jnp
from jax.experimental import pallas as pl
from jax.experimental.pallas import tpu as pltpu


KH = KW = 3  # depthwise kernel (kernel_size=3, stride=1, padding=1, dilation=1)


def _bsconvs_kernel(x_ref, b_ref, tap_ref, bias_ref, o_ref, fea_ref, *, kh, kw, cout):
    # x_ref:    (1, Hp, Wp*Cin)        padded input, lane index = w*Cin + ci
    # b_ref:    (Wp*Cin, Wp*Cout)      block-diagonal fused pointwise weights
    # tap_ref:  (KH*KW, W*Cout)        depthwise tap weights tiled over W (lane = w*Cout + c)
    # bias_ref: (1, W*Cout)            depthwise bias tiled over W
    # o_ref:    (1, H, W*Cout)         lane-dense output tile
    # fea_ref:  (Hp, Wp*Cout)          VMEM scratch holding the fused-pointwise result
    H = o_ref.shape[1]
    WC = o_ref.shape[2]

    # Fused pw1+pw2: one MXU matmul, result already in the interleaved (w*Cout + c) layout.
    fea_ref[...] = jnp.dot(
        x_ref[0], b_ref[...], preferred_element_type=jnp.float32
    )

    # Depthwise 3x3: bias + sum of 9 statically-offset windows times per-channel taps.
    acc = jnp.broadcast_to(bias_ref[...].astype(jnp.float32), (H, WC))
    for dh in range(kh):
        for dw in range(kw):
            window = fea_ref[pl.ds(dh, H), pl.ds(dw * cout, WC)]     # (H, WC) offset load
            tap = tap_ref[pl.ds(dh * kw + dw, 1), :]                 # (1, WC)
            acc = acc + window * tap
    o_ref[0] = acc.astype(o_ref.dtype)


def bsconvs_forward(x_nchw, w1, w2, dw_w, dw_b):
    """BSConvS forward.

    x_nchw: (N, Cin, H, W)   float32
    w1:     (Cmid, Cin)      pw1.weight[:, :, 0, 0]
    w2:     (Cout, Cmid)     pw2.weight[:, :, 0, 0]
    dw_w:   (Cout, KH, KW)   dw.weight[:, 0, :, :]  (depthwise, groups=Cout)
    dw_b:   (Cout,)          dw.bias
    returns (N, Cout, H, W)
    """
    N, Cin, H, W = x_nchw.shape
    Cout = w2.shape[0]
    pad = 1
    Hp, Wp = H + 2 * pad, W + 2 * pad
    WC = W * Cout

    # --- weight prep (wrapper-side, plain XLA) ------------------------------------------
    # Fuse the two bias-free pointwise convs: W12 (Cin, Cout).
    w12 = jnp.transpose(w2 @ w1)                                   # (Cin, Cout)
    # Expand to block-diagonal over the Wp positions so the kernel matmul's output lanes
    # are already ordered as w*Cout + c (lane-dense interleave).
    eye_w = jnp.eye(Wp, dtype=x_nchw.dtype)
    bdiag = jnp.einsum('wv,io->wivo', eye_w, w12).reshape(Wp * Cin, Wp * Cout)

    # Depthwise taps / bias tiled over W into the same lane order.
    dww = jnp.transpose(dw_w, (1, 2, 0))                           # (KH, KW, Cout)
    taps = jnp.broadcast_to(dww[:, :, None, :], (KH, KW, W, Cout)).reshape(KH * KW, WC)
    bias = jnp.broadcast_to(dw_b[None, :], (W, Cout)).reshape(1, WC)

    # --- input prep: NCHW -> padded, channel-interleaved (N, Hp, Wp*Cin) ----------------
    x_nhwc = jnp.transpose(x_nchw, (0, 2, 3, 1))
    x_pad = jnp.pad(x_nhwc, ((0, 0), (pad, pad), (pad, pad), (0, 0)))
    x_flat = x_pad.reshape(N, Hp, Wp * Cin)

    kernel = partial(_bsconvs_kernel, kh=KH, kw=KW, cout=Cout)

    out = pl.pallas_call(
        kernel,
        out_shape=jax.ShapeDtypeStruct((N, H, WC), x_nchw.dtype),
        grid_spec=pltpu.PrefetchScalarGridSpec(
            num_scalar_prefetch=0,
            grid=(N,),
            in_specs=[
                pl.BlockSpec((1, Hp, Wp * Cin), lambda n: (n, 0, 0)),
                pl.BlockSpec((Wp * Cin, Wp * Cout), lambda n: (0, 0)),
                pl.BlockSpec((KH * KW, WC), lambda n: (0, 0)),
                pl.BlockSpec((1, WC), lambda n: (0, 0)),
            ],
            out_specs=pl.BlockSpec((1, H, WC), lambda n: (n, 0, 0)),
            scratch_shapes=[pltpu.VMEM((Hp, Wp * Cout), jnp.float32)],
        ),
        compiler_params=pltpu.CompilerParams(
            dimension_semantics=("parallel",),
        ),
    )(x_flat, bdiag, taps, bias)

    # (N, H, W*Cout) -> NCHW
    return jnp.transpose(out.reshape(N, H, W, Cout), (0, 3, 1, 2))


def _reference_forward(x_nchw, w1, w2, dw_w, dw_b):
    """Pure-JAX reference using lax conv (NCHW, like PyTorch)."""
    dn = jax.lax.conv_dimension_numbers(x_nchw.shape, (1, 1, 1, 1), ('NCHW', 'OIHW', 'NCHW'))
    fea = jax.lax.conv_general_dilated(
        x_nchw, w1[:, :, None, None], (1, 1), 'VALID', dimension_numbers=dn)
    fea = jax.lax.conv_general_dilated(
        fea, w2[:, :, None, None], (1, 1), 'VALID', dimension_numbers=dn)
    Cout = dw_w.shape[0]
    fea = jax.lax.conv_general_dilated(
        fea, dw_w[:, None, :, :], (1, 1), ((1, 1), (1, 1)),
        dimension_numbers=dn, feature_group_count=Cout)
    return fea + dw_b[None, :, None, None]


if __name__ == "__main__":
    # Module config (PyTorch __init__ defaults: k=3, s=1, p=1, bias=True, p=0.25)
    N, Cin, H, W = 2, 4, 16, 16
    Cout = 8
    p = 0.25
    min_mid_channels = 4
    Cmid = min(Cin, max(min_mid_channels, math.ceil(p * Cin)))  # = 4

    key = jax.random.PRNGKey(0)
    kx, k1, k2, k3, k4 = jax.random.split(key, 5)

    x = jax.random.normal(kx, (N, Cin, H, W), dtype=jnp.float32)
    w1 = jax.random.normal(k1, (Cmid, Cin), dtype=jnp.float32) * (1.0 / math.sqrt(Cin))
    w2 = jax.random.normal(k2, (Cout, Cmid), dtype=jnp.float32) * (1.0 / math.sqrt(Cmid))
    dw_w = jax.random.normal(k3, (Cout, KH, KW), dtype=jnp.float32) * (1.0 / 3.0)
    dw_b = jax.random.normal(k4, (Cout,), dtype=jnp.float32) * 0.1

    out = jax.block_until_ready(bsconvs_forward(x, w1, w2, dw_w, dw_b))
    ref = _reference_forward(x, w1, w2, dw_w, dw_b)

    assert out.shape == (N, Cout, H, W), out.shape
    max_err = float(jnp.max(jnp.abs(out - ref)))
    assert jnp.allclose(out, ref, atol=1e-4, rtol=1e-4), max_err

    print("KERNEL_OK")
</pallas_src>

<mosaic_0001>
module attributes {stable_mosaic.version = 11 : i64} {
  func.func @_bsconvs_kernel(%arg0: i32, %arg1: memref<1x18x72xf32, #tpu.memory_space<vmem>>, %arg2: memref<72x144xf32, #tpu.memory_space<vmem>>, %arg3: memref<9x128xf32, #tpu.memory_space<vmem>>, %arg4: memref<1x128xf32, #tpu.memory_space<vmem>>, %arg5: memref<1x16x128xf32, #tpu.memory_space<vmem>>, %arg6: memref<18x144xf32, #tpu.memory_space<vmem>>) attributes {dimension_semantics = [#tpu.dimension_semantics<parallel>], iteration_bounds = array<i64: 2>, scalar_prefetch = 0 : i64, scratch_operands = 1 : i64, tpu.core_type = #tpu.core_type<tc>, window_params = [{transform_indices = @transform_0, window_bounds = array<i64: 1, 18, 72>}, {pipeline_mode = #tpu.pipeline_mode<synchronous>, transform_indices = @transform_1, window_bounds = array<i64: 72, 144>}, {pipeline_mode = #tpu.pipeline_mode<synchronous>, transform_indices = @transform_2, window_bounds = array<i64: 9, 128>}, {pipeline_mode = #tpu.pipeline_mode<synchronous>, transform_indices = @transform_3, window_bounds = array<i64: 1, 128>}, {transform_indices = @transform_4, window_bounds = array<i64: 1, 16, 128>}]} {
    %c0 = arith.constant 0 : index
    %c0_0 = arith.constant 0 : index
    %c0_1 = arith.constant 0 : index
    %0 = vector.load %arg1[%c0, %c0_0, %c0_1] : memref<1x18x72xf32, #tpu.memory_space<vmem>>, vector<1x18x72xf32>
    %1 = vector.shape_cast %0 : vector<1x18x72xf32> to vector<18x72xf32>
    %c0_2 = arith.constant 0 : index
    %c0_3 = arith.constant 0 : index
    %2 = vector.load %arg2[%c0_2, %c0_3] : memref<72x144xf32, #tpu.memory_space<vmem>>, vector<72x144xf32>
    %cst = arith.constant dense<0.000000e+00> : vector<18x144xf32>
    %3 = tpu.matmul %1, %2, %cst {dimension_numbers = #tpu.dot_dimension_numbers<[1], [0], [0], [1], [0, 0, 1, 1], [], []>} : vector<18x72xf32>, vector<72x144xf32>, vector<18x144xf32> -> vector<18x144xf32>
    %c0_4 = arith.constant 0 : index
    %c0_5 = arith.constant 0 : index
    %4 = vector.load %arg6[%c0_4, %c0_5] : memref<18x144xf32, #tpu.memory_space<vmem>>, vector<18x144xf32>
    tpu.vector_store %arg6[%c0_4, %c0_5], %3 {strides = array<i32>} : memref<18x144xf32, #tpu.memory_space<vmem>>, vector<18x144xf32>,
    %c0_6 = arith.constant 0 : index
    %c0_7 = arith.constant 0 : index
    %5 = vector.load %arg4[%c0_6, %c0_7] : memref<1x128xf32, #tpu.memory_space<vmem>>, vector<1x128xf32>
    %6 = vector.shape_cast %5 : vector<1x128xf32> to vector<1x128xf32>
    %7 = vector.broadcast %6 : vector<1x128xf32> to vector<16x128xf32>
    %c0_8 = arith.constant 0 : index
    %c0_9 = arith.constant 0 : index
    %8 = vector.load %arg6[%c0_8, %c0_9] : memref<18x144xf32, #tpu.memory_space<vmem>>, vector<16x128xf32>
    %c0_10 = arith.constant 0 : index
    %c0_11 = arith.constant 0 : index
    %9 = vector.load %arg3[%c0_10, %c0_11] : memref<9x128xf32, #tpu.memory_space<vmem>>, vector<1x128xf32>
    %10 = vector.broadcast %9 : vector<1x128xf32> to vector<16x128xf32>
    %11 = arith.mulf %8, %10 : vector<16x128xf32>
    %12 = arith.addf %7, %11 : vector<16x128xf32>
    %c0_12 = arith.constant 0 : index
    %c8 = arith.constant 8 : index
    %13 = vector.load %arg6[%c0_12, %c8] : memref<18x144xf32, #tpu.memory_space<vmem>>, vector<16x128xf32>
    %c1 = arith.constant 1 : index
    %c0_13 = arith.constant 0 : index
    %14 = vector.load %arg3[%c1, %c0_13] : memref<9x128xf32, #tpu.memory_space<vmem>>, vector<1x128xf32>
    %15 = vector.broadcast %14 : vector<1x128xf32> to vector<16x128xf32>
    %16 = arith.mulf %13, %15 : vector<16x128xf32>
    %17 = arith.addf %12, %16 : vector<16x128xf32>
    %c0_14 = arith.constant 0 : index
    %c16 = arith.constant 16 : index
    %18 = vector.load %arg6[%c0_14, %c16] : memref<18x144xf32, #tpu.memory_space<vmem>>, vector<16x128xf32>
    %c2 = arith.constant 2 : index
    %c0_15 = arith.constant 0 : index
    %19 = vector.load %arg3[%c2, %c0_15] : memref<9x128xf32, #tpu.memory_space<vmem>>, vector<1x128xf32>
    %20 = vector.broadcast %19 : vector<1x128xf32> to vector<16x128xf32>
    %21 = arith.mulf %18, %20 : vector<16x128xf32>
    %22 = arith.addf %17, %21 : vector<16x128xf32>
    %c1_16 = arith.constant 1 : index
    %c0_17 = arith.constant 0 : index
    %23 = vector.load %arg6[%c1_16, %c0_17] : memref<18x144xf32, #tpu.memory_space<vmem>>, vector<16x128xf32>
    %c3 = arith.constant 3 : index
    %c0_18 = arith.constant 0 : index
    %24 = vector.load %arg3[%c3, %c0_18] : memref<9x128xf32, #tpu.memory_space<vmem>>, vector<1x128xf32>
    %25 = vector.broadcast %24 : vector<1x128xf32> to vector<16x128xf32>
    %26 = arith.mulf %23, %25 : vector<16x128xf32>
    %27 = arith.addf %22, %26 : vector<16x128xf32>
    %c1_19 = arith.constant 1 : index
    %c8_20 = arith.constant 8 : index
    %28 = vector.load %arg6[%c1_19, %c8_20] : memref<18x144xf32, #tpu.memory_space<vmem>>, vector<16x128xf32>
    %c4 = arith.constant 4 : index
    %c0_21 = arith.constant 0 : index
    %29 = vector.load %arg3[%c4, %c0_21] : memref<9x128xf32, #tpu.memory_space<vmem>>, vector<1x128xf32>
    %30 = vector.broadcast %29 : vector<1x128xf32> to vector<16x128xf32>
    %31 = arith.mulf %28, %30 : vector<16x128xf32>
    %32 = arith.addf %27, %31 : vector<16x128xf32>
    %c1_22 = arith.constant 1 : index
    %c16_23 = arith.constant 16 : index
    %33 = vector.load %arg6[%c1_22, %c16_23] : memref<18x144xf32, #tpu.memory_space<vmem>>, vector<16x128xf32>
    %c5 = arith.constant 5 : index
    %c0_24 = arith.constant 0 : index
    %34 = vector.load %arg3[%c5, %c0_24] : memref<9x128xf32, #tpu.memory_space<vmem>>, vector<1x128xf32>
    %35 = vector.broadcast %34 : vector<1x128xf32> to vector<16x128xf32>
    %36 = arith.mulf %33, %35 : vector<16x128xf32>
    %37 = arith.addf %32, %36 : vector<16x128xf32>
    %c2_25 = arith.constant 2 : index
    %c0_26 = arith.constant 0 : index
    %38 = vector.load %arg6[%c2_25, %c0_26] : memref<18x144xf32, #tpu.memory_space<vmem>>, vector<16x128xf32>
    %c6 = arith.constant 6 : index
    %c0_27 = arith.constant 0 : index
    %39 = vector.load %arg3[%c6, %c0_27] : memref<9x128xf32, #tpu.memory_space<vmem>>, vector<1x128xf32>
    %40 = vector.broadcast %39 : vector<1x128xf32> to vector<16x128xf32>
    %41 = arith.mulf %38, %40 : vector<16x128xf32>
    %42 = arith.addf %37, %41 : vector<16x128xf32>
    %c2_28 = arith.constant 2 : index
    %c8_29 = arith.constant 8 : index
    %43 = vector.load %arg6[%c2_28, %c8_29] : memref<18x144xf32, #tpu.memory_space<vmem>>, vector<16x128xf32>
    %c7 = arith.constant 7 : index
    %c0_30 = arith.constant 0 : index
    %44 = vector.load %arg3[%c7, %c0_30] : memref<9x128xf32, #tpu.memory_space<vmem>>, vector<1x128xf32>
    %45 = vector.broadcast %44 : vector<1x128xf32> to vector<16x128xf32>
    %46 = arith.mulf %43, %45 : vector<16x128xf32>
    %47 = arith.addf %42, %46 : vector<16x128xf32>
    %c2_31 = arith.constant 2 : index
    %c16_32 = arith.constant 16 : index
    %48 = vector.load %arg6[%c2_31, %c16_32] : memref<18x144xf32, #tpu.memory_space<vmem>>, vector<16x128xf32>
    %c8_33 = arith.constant 8 : index
    %c0_34 = arith.constant 0 : index
    %49 = vector.load %arg3[%c8_33, %c0_34] : memref<9x128xf32, #tpu.memory_space<vmem>>, vector<1x128xf32>
    %50 = vector.broadcast %49 : vector<1x128xf32> to vector<16x128xf32>
    %51 = arith.mulf %48, %50 : vector<16x128xf32>
    %52 = arith.addf %47, %51 : vector<16x128xf32>
    %c0_35 = arith.constant 0 : index
    %c0_36 = arith.constant 0 : index
    %c0_37 = arith.constant 0 : index
    %53 = vector.load %arg5[%c0_35, %c0_36, %c0_37] : memref<1x16x128xf32, #tpu.memory_space<vmem>>, vector<1x16x128xf32>
    %54 = vector.shape_cast %53 : vector<1x16x128xf32> to vector<16x128xf32>
    %55 = vector.shape_cast %52 : vector<16x128xf32> to vector<1x16x128xf32>
    tpu.vector_store %arg5[%c0_35, %c0_36, %c0_37], %55 {strides = array<i32>} : memref<1x16x128xf32, #tpu.memory_space<vmem>>, vector<1x16x128xf32>,
    return
  }
  func.func @transform_0(%arg0: i32) -> (i32, i32, i32) {
    %c0_i32 = arith.constant 0 : i32
    %c0_i32_0 = arith.constant 0 : i32
    %c0_i32_1 = arith.constant 0 : i32
    return %arg0, %c0_i32, %c0_i32_0 : i32, i32, i32
  }
  func.func @transform_1(%arg0: i32) -> (i32, i32) {
    %c0_i32 = arith.constant 0 : i32
    %c0_i32_0 = arith.constant 0 : i32
    %c0_i32_1 = arith.constant 0 : i32
    return %c0_i32, %c0_i32_0 : i32, i32
  }
  func.func @transform_2(%arg0: i32) -> (i32, i32) {
    %c0_i32 = arith.constant 0 : i32
    %c0_i32_0 = arith.constant 0 : i32
    %c0_i32_1 = arith.constant 0 : i32
    return %c0_i32, %c0_i32_0 : i32, i32
  }
  func.func @transform_3(%arg0: i32) -> (i32, i32) {
    %c0_i32 = arith.constant 0 : i32
    %c0_i32_0 = arith.constant 0 : i32
    %c0_i32_1 = arith.constant 0 : i32
    return %c0_i32, %c0_i32_0 : i32, i32
  }
  func.func @transform_4(%arg0: i32) -> (i32, i32, i32) {
    %c0_i32 = arith.constant 0 : i32
    %c0_i32_0 = arith.constant 0 : i32
    %c0_i32_1 = arith.constant 0 : i32
    return %arg0, %c0_i32, %c0_i32_0 : i32, i32, i32
  }
}

</mosaic_0001>

<bundles_post_ra>
// kernel: tpu_custom_call.1
= control target key start
LH: loop header
LB: loop body
LE: loop exit
PB: predicated region body
PF: predicated region fallthrough
CT: control target
= control target key end

     0   :  { %9 = vsyncpa [#allocation4], 0  ;;  %s1204_s0 = inlined_call_operand.vmem [shape: f32[2,18,72], index: 0, kind: input, shape index: {}]   ;;  %s1205_s1 = inlined_call_operand.hbm [shape: f32[72,144], index: 1, kind: input, shape index: {}]   ;;  %s1206_s2 = inlined_call_operand.vmem [shape: f32[9,128], index: 2, kind: input, shape index: {}]   ;;  %s1207_s3 = inlined_call_operand.vmem [shape: f32[1,128], index: 3, kind: input, shape index: {}]   ;;  %s1208_s4 = inlined_call_operand.hbm [shape: f32[2,16,128], index: 4, kind: output, shape index: {}]  }
   0x1   :  { %10 = vsyncpa [#allocation5], 0 }
   0x2   :  { %12 = vsyncpa [#allocation5 + $0x1], 0  ;;  %s917_s15 = smov 0   ;;  %s919_s16 = smov 0  }
   0x3   :  { %s921_s17 = smov 0   ;;  %s923_s18 = smov 0  }
   0x4 LB: > { %s938_s19 = sadd.s32 4294967295, %s882_s18   ;;  %s680_s20 = sadd.s32 4294967294, %s882_s18   ;;  %s882_s18 = sphi %s923_s18, %s1214_s18   ;;  %s878_s17 = sphi %s921_s17, %s1213_s17   ;;  %s874_s16 = sphi %s919_s16, %s1212_s16   ;;  %s870_s15 = sphi %s917_s15, %s1211_s15  }
   0x5   : > { %s942_s21 = sadd.s32 1, %s882_s18   ;;  %s114_s22 = sadd.s32 1, %s878_s17 }
   0x6   : > { %s111_s23 = ssub.s32 %s882_s18, %s942_s21  ;;  %p124_p0 = scmp.ne.s32.totalorder %s878_s17, %s874_s16 }
   0x7   : > { %p112_p1 = scmp.eq.s32.totalorder %s111_s23, 0  ;;  %p125_p2 = scmp.eq.s32.totalorder %s938_s19, 1 }
   0x8   : > { %p130_p3 = scmp.ne.s32.totalorder %s874_s16, %s870_s15  ;;  %p131_p4 = scmp.eq.s32.totalorder %s680_s20, 1 }
   0x9   : > { %s953_s24 = scalar_select %p112_p1, %s878_s17, %s114_s22  }
   0xa   : > { %p955_p5 = por %p125_p2, %p124_p0  ;;  %p959_p6 = por %p131_p4, %p130_p3 }
   0xb   : > { %p681_p7 = scmp.ge.s32.totalorder %s882_s18, 1  ;;  %p138_p8 = scmp.lt.s32.totalorder %s882_s18, 3 }
   0xc   : > { %p733_p9 = scmp.eq.s32.totalorder %s938_s19, 0  ;;  %s149_s29 = sshll.u32 %s1205_s1, 4  ;;  %s150_s29 = int_to_ptr.hbm [resolvable:$true] %s149_s29 }
   0xd   : > { %p139_p10 = pnand %p681_p7, %p138_p8  ;;  %s884_s30 = smov [#allocation3]  }
   0xe   : > { %s151_s5 = sshll.u32 %s884_s30, 4  ;;  %s885_s6 = smov 256   ;;  %s152_s5 = int_to_ptr.vmem [resolvable:$true] %s151_s5 }
   0xf   : > { %p725_p11 = pneg %p139_p10  ;;  %s886_s7 = smov 16  }
  0x10   : > { %181 = sbr.rel (%p139_p10) target bundleno = 356 (0x164), region = 36 }
  0x11   : > { %p726_p12 = pnand %p733_p9, %p725_p11 }
  0x13   : > { %728 = dma.hbm_to_vmem [thread:$0]  (!%p726_p12), %s150_s29, 2304, %s152_s5, [#allocation4], %s885_s6, %s885_s6, %s886_s7  }
  0x15   : > { %861 = dma.done.wait (%p733_p9), [#allocation4], 2304  }
  0x16   : > { %863 = vsyncadd (%p733_p9), [#allocation4], 4294964992  ;;  %v232_v0 = vld [vmem:[#allocation3 + $0x80] sm:$0xff]  ;;  %v233_v1 = vld [vmem:[#allocation3 + $0x88] sm:$0xff]  ;;  %p208_p13 = scmp.lt.s32.totalorder %s938_s19, 1  ;;  %vm234_vm0 = vcmask 588800  }
  0x17   : > { %v230_v2 = vld [vmem:[#allocation3 + $0x70] sm:$0xff]  ;;  %251 = vmatpush.msra.mxu0 %v232_v0  ;;  %700 = vmatpush.msra.mxu2 %v232_v0  ;;  %v231_v3 = vld [vmem:[#allocation3 + $0x78] sm:$0xff]  ;;  %v228_v4 = vld [vmem:[#allocation3 + $0x60] sm:$0xff]  ;;  %s887_s28 = smov 8   ;;  %vm297_vm1 = vcmask 130048   ;;  %s889_s10 = smov 120  }
  0x18   : > { %277 = vmatpush.msra.mxu1 %v233_v1  ;;  %709 = vmatpush.msra.mxu3 %v233_v1  ;;  %v229_v5 = vld [vmem:[#allocation3 + $0x68] sm:$0xff]  ;;  %v226_v6 = vld [vmem:[#allocation3 + $0x50] sm:$0xff]  ;;  %v227_v7 = vld [vmem:[#allocation3 + $0x58] sm:$0xff]  ;;  %s209_s8 = scalar_select %p208_p13, %s938_s19, 1  ;;  %vm302_vm2 = vcmask 123904   ;;  %vm386_vm3 = vcmask 1046528  }
  0x19   : > { %252 = vmatpush.msra.mxu0 %v230_v2  ;;  %701 = vmatpush.msra.mxu2 %v230_v2  ;;  %v224_v8 = vld [vmem:[#allocation3 + $0x40] sm:$0xff]  ;;  %v225_v9 = vld [vmem:[#allocation3 + $0x48] sm:$0xff]  ;;  %v222_v10 = vld [vmem:[#allocation3 + $0x30] sm:$0xff]  ;;  %s890_s20 = smov 112   ;;  %vm492_vm4 = vcmask 1045504   ;;  %vm340_vm5 = vcmask 982016  }
  0x1a   : > { %278 = vmatpush.msra.mxu1 %v231_v3  ;;  %710 = vmatpush.msra.mxu3 %v231_v3  ;;  %v223_v11 = vld [vmem:[#allocation3 + $0x38] sm:$0xff]  ;;  %s718_s9 = smul.u32 24, %s209_s8  ;;  %v220_v12 = vld [vmem:[#allocation3 + $0x20] sm:$0xff]  ;;  %v221_v13 = vld [vmem:[#allocation3 + $0x28] sm:$0xff]  ;;  %vm369_vm6 = vcmask 916480   ;;  %s205_s30 = sand.u32 1, %s874_s16  }
  0x1b   : > { %253 = vmatpush.msra.mxu0 %v228_v4  ;;  %702 = vmatpush.msra.mxu2 %v228_v4  ;;  %v218_v14 = vld [vmem:[#allocation3 + $0x10] sm:$0xff]  ;;  %v219_v15 = vld [vmem:[#allocation3 + $0x18] sm:$0xff]  ;;  %v216_v16 = vld [vmem:[#allocation3] sm:$0xff]  ;;  %s686_s5 = sshll.u32 %s205_s30, 4  ;;  %s699_s6 = sshll.u32 %s938_s19, 4 }
  0x1c   : > { %279 = vmatpush.msra.mxu1 %v229_v5  ;;  %711 = vmatpush.msra.mxu3 %v229_v5  ;;  %s212_s12 = scalar_lea.vmem %s1204_s0, %s718_s9  ;;  %v217_v17 = vld [vmem:[#allocation3 + $0x8] sm:$0xff]  ;;  %v776_v20 = vld [vmem:[%s1206_s2 + $0x4] ss:$0 sm:$0xff]  ;;  %v777_v21 = vld [vmem:[%s1206_s2 + $0x1] ss:$0 sm:$0xff]  ;;  %s888_s9 = smov 16  }
  0x1d   : > { %254 = vmatpush.msra.mxu0 %v226_v6  ;;  %703 = vmatpush.msra.mxu2 %v226_v6  ;;  %v214_v18 = vld [vmem:[%s212_s12 + $0x8] sm:$0xff]  ;;  %v213_v19 = vld [vmem:[%s212_s12] sm:$0xff]  ;;  %v215_v23 = vld [vmem:[%s212_s12 + $0x10] sm:$0x3]  ;;  %s591_s19 = scalar_lea.sflag [#allocation5], %s205_s30  ;;  %s836_s23 = scalar_lea.hbm %s1208_s4, 32 }
  0x1e   : > { %280 = vmatpush.msra.mxu1 %v227_v7  ;;  %712 = vmatpush.msra.mxu3 %v227_v7  ;;  %v780_v22 = vld [vmem:[%s1206_s2 + $0x7] ss:$0 sm:$0xff]  ;;  %v778_v24 = vld [vmem:[%s1206_s2 + $0x5] ss:$0 sm:$0xff]  ;;  %v779_v25 = vld [vmem:[%s1206_s2 + $0x2] ss:$0 sm:$0xff] }
  0x1f   : > { %255 = vmatpush.msra.mxu0 %v224_v8  ;;  %704 = vmatpush.msra.mxu2 %v224_v8  ;;  %v781_v26 = vld [vmem:[%s1206_s2 + $0x8] ss:$0 sm:$0xff]  ;;  %v784_v34 = vld [vmem:[%s1206_s2 + $0x3] ss:$0 sm:$0xff]  ;;  %v785_v38 = vld [vmem:[%s1206_s2 + $0x6] ss:$0 sm:$0xff] }
  0x20   : > { %281 = vmatpush.msra.mxu1 %v225_v9  ;;  %713 = vmatpush.msra.mxu3 %v225_v9 }
  0x21   : > { %256 = vmatpush.msra.mxu0 %v222_v10  ;;  %705 = vmatpush.msra.mxu2 %v222_v10 }
  0x22   : > { %282 = vmatpush.msra.mxu1 %v223_v11  ;;  %714 = vmatpush.msra.mxu3 %v223_v11 }
  0x23   : > { %257 = vmatpush.msra.mxu0 %v220_v12  ;;  %706 = vmatpush.msra.mxu2 %v220_v12 }
  0x24   : > { %283 = vmatpush.msra.mxu1 %v221_v13  ;;  %715 = vmatpush.msra.mxu3 %v221_v13 }
  0x25   : > { %258 = vmatpush.msra.mxu0 %v218_v14  ;;  %707 = vmatpush.msra.mxu2 %v218_v14 }
  0x26   : > { %284 = vmatpush.msra.mxu1 %v219_v15  ;;  %716 = vmatpush.msra.mxu3 %v219_v15 }
  0x27   : > { %259 = vmatpush.msra.mxu0 %v216_v16  ;;  %708 = vmatpush.msra.mxu2 %v216_v16 }
  0x28   : > { %285 = vmatpush.msra.mxu1 %v217_v17  ;;  %717 = vmatpush.msra.mxu3 %v217_v17 }
  0x29   : > { %688 = vmatmul.msk.f32.vlgmr.msra.gmra.mxu0 %vm234_vm0, %v213_v19  ;;  %689 = vmatmul.msk.f32.vlgmr.msra.gmra.mxu2 %vm234_vm0, %v214_v18 }
  0x2a   : > { %691 = vmatmul.msk.f32.vlgmr.msra.gmra.mxu1 %vm234_vm0, %v213_v19  ;;  %692 = vmatmul.msk.f32.vlgmr.msra.gmra.mxu3 %vm234_vm0, %v214_v18 }
  0x2b   : > { %401 = vrot.lane.b32.xlu1 %v776_v20, %s887_s28  ;;  %321 = vrot.lane.b32.xlu0 %v777_v21, %s887_s28 }
  0x2c   : > { %507 = vrot.lane.b32.xlu2 %v780_v22, %s887_s28 }
  0x31   : > { %690 = vmatmul.msk.f32.gmra.mxu2 %vm234_vm0, %v215_v23 }
  0x32   : > { %693 = vmatmul.msk.f32.gmra.mxu3 %vm234_vm0, %v215_v23 }
  0x33   : > { %443 = vrot.lane.b32.xlu1 %v778_v24, %s888_s9  ;;  %350 = vrot.lane.b32.xlu0 %v779_v25, %s888_s9 }
  0x34   : > { %549 = vrot.lane.b32.xlu2 %v781_v26, %s888_s9  ;;  %s602_s9 = scalar_lea.hbm %s1208_s4, %s699_s6 }
  0x35   : > { %s605_s12 = sshll.u32 %s602_s9, 4  ;;  %s606_s12 = int_to_ptr.hbm [resolvable:$true] %s605_s12 }
  0x36   : > { %s830_s13 = sshra.s32 %s606_s12, 4  ;;  %s831_s13 = int_to_ptr.hbm [resolvable:$true] %s830_s13 }
  0x37   : > { %s832_s14 = scalar_lea.hbm %s831_s13, 16  ;;  %p837_p3 = scmp.lt.s32.totalorder %s831_s13, %s1208_s4 }
  0x38   : > { %p833_p0 = scmp.ne.s32.totalorder %s831_s13, %s832_s14  ;;  %p838_p4 = scmp.lt.s32.totalorder %s836_s23, %s832_s14 }
  0x3a   : > { %p834_p1 = pnand %p833_p0, %p955_p5  ;;  %p839_p7 = por %p838_p4, %p837_p3 }
  0x3c   : > { %p835_p2 = pneg %p834_p1 }
  0x3e   : > { %p840_p8 = pnand %p839_p7, %p835_p2 }
  0x86   : > { %v1055_v60 = vpop.permute.xlu2 %507 }
  0x8e   : > { %v550_v24 = vpop.permute.xlu2 %549 }
  0x9d   : > { %v322_v27 = vpop.permute.xlu0 %321  ;;  %v1029_v43 = vpop.permute.xlu1 %401 }
  0xa5   : > { %v351_v33 = vpop.permute.xlu0 %350  ;;  %v1059_v1 = vpop.permute.xlu1 %443 }
  0xa6   : > { %v1007_v28 = vpop.f32.mrf.mxu0 }
  0xa7   : > { %296 = vst [vmem:[#allocation2] sm:$0xff] %v1007_v28  ;;  %v287_v29 = vpop.f32.mrf.mxu1  ;;  %v324_v30 = vmul.f32 %v322_v27, %v1007_v28  ;;  %v353_v51 = vmul.f32 %v351_v33, %v1007_v28 }
  0xa8   : > { %298 = vst.msk [vmem:[#allocation2 + $0x8] sm:$0xff] %vm297_vm1, %v287_v29 }
  0xa9   : > { %332 = vrot.lane.b32.xlu0 %v324_v30, %s889_s10 }
  0xac   : > { %v1012_v31 = vpop.f32.mrf.mxu2 }
  0xad   : > { %v290_v32 = vpop.f32.mrf.mxu3  ;;  %v1027_v41 = vmul.f32 %v784_v34, %v1012_v31  ;;  %v326_v50 = vmul.f32 %v322_v27, %v1012_v31  ;;  %v487_v53 = vmul.f32 %v785_v38, %v1012_v31  ;;  %v1045_v55 = vmul.f32 %v1029_v43, %v1012_v31 }
  0xae   : > { %300 = vst.msk [vmem:[#allocation2 + $0x18] sm:$0xff] %vm297_vm1, %v290_v32  ;;  %v1022_v39 = vld [vmem:[#allocation2] sm:$0xfe]  ;;  %v355_v0 = vmul.f32 %v351_v33, %v1012_v31  ;;  %v448_v23 = vmul.f32 %v1059_v1, %v1012_v31  ;;  %v554_v30 = vmul.f32 %v550_v24, %v1012_v31  ;;  %v512_v32 = vmul.f32 %v1055_v60, %v1012_v31 }
  0xaf   : > { %v316_v35 = vld [vmem:[#allocation2 + $0x8] sm:$0xff]  ;;  %v1024_v40 = vld [vmem:[#allocation2] sm:$0xfc]  ;;  %v380_v46 = vmul.f32 %v784_v34, %v1022_v39  ;;  %v388_v49 = vrot.slane %v1027_v41, 1  ;;  %v404_v54 = vmul.f32 %v1029_v43, %v1022_v39  ;;  %v494_v58 = vrot.slane %v487_v53, 2 }
  0xb0   : > { %v354_v36 = vmul.f32 %v351_v33, %v316_v35  ;;  %v325_v37 = vmul.f32 %v322_v27, %v316_v35  ;;  %v486_v47 = vmul.f32 %v785_v38, %v1024_v40  ;;  %v417_v62 = vrot.slane %v1045_v55, 1  ;;  %v396_v63 = vld [vmem:[#allocation2 + $0x8] sm:$0xfe] }
  0xb1   : > { %v387_v52 = vrot.slane %v380_v46, 1  ;;  %v416_v61 = vrot.slane %v404_v54, 1  ;;  %v1061_v2 = vld [vmem:[#allocation2 + $0x8] sm:$0xfc]  ;;  %v405_v5 = vmul.f32 %v1029_v43, %v396_v63  ;;  %v447_v11 = vmul.f32 %v1059_v1, %v396_v63 }
  0xb2   : > { %363 = vrot.lane.b32.xlu2 %v354_v36, %s890_s20  ;;  %334 = vrot.lane.b32.xlu1 %v325_v37, %s889_s10  ;;  %v493_v56 = vrot.slane %v486_v47, 2  ;;  %v511_v10 = vmul.f32 %v1055_v60, %v1061_v2  ;;  %v446_v26 = vmul.f32 %v1059_v1, %v1022_v39  ;;  %v552_v35 = vmul.f32 %v550_v24, %v1024_v40 }
  0xb3   : > { %v1050_v57 = vsel %vm386_vm3, %v387_v52, %v388_v49  ;;  %v418_v7 = vsel %vm386_vm3, %v416_v61, %v417_v62  ;;  %v419_v16 = vrot.slane %v405_v5, 1  ;;  %v461_v22 = vrot.slane %v447_v11, 1 }
  0xb4   : > { %v267_v42 = vpop.f32.mrf.mxu2  ;;  %v1053_v59 = vsel %vm492_vm4, %v493_v56, %v494_v58  ;;  %v525_v21 = vrot.slane %v511_v10, 2  ;;  %v510_v36 = vmul.f32 %v1055_v60, %v1024_v40  ;;  %v458_v37 = vrot.slane %v446_v26, 1 }
  0xb5   : > { %301 = vst [vmem:[#allocation2 + $0x20] sm:$0x3] %v267_v42  ;;  %v293_v44 = vpop.f32.mrf.mxu3  ;;  %v1031_v45 = vld [vmem:[#allocation2 + $0x18] sm:$0xff]  ;;  %v564_v41 = vrot.slane %v552_v35, 2  ;;  %v565_v42 = vrot.slane %v554_v30, 2  ;;  %v523_v46 = vrot.slane %v512_v32, 2  ;;  %v553_v55 = vmul.f32 %v550_v24, %v1061_v2 }
  0xb6   : > { %303 = vst.msk [vmem:[#allocation2 + $0x28] sm:$0x3] %vm302_vm2, %v293_v44  ;;  %v327_v48 = vmul.f32 %v322_v27, %v1031_v45  ;;  %v1065_v3 = vmul.f32 %v1029_v43, %v1031_v45  ;;  %v356_v4 = vmul.f32 %v351_v33, %v1031_v45  ;;  %v1077_v8 = vmul.f32 %v1055_v60, %v1031_v45 }
  0xb7   : > { %v449_v9 = vmul.f32 %v1059_v1, %v1031_v45  ;;  %v522_v44 = vrot.slane %v510_v36, 2 }
  0xb8   : > { %338 = vrot.lane.b32.xlu0 %v327_v48, %s889_s10  ;;  %v420_v13 = vrot.slane %v1065_v3, 1  ;;  %v526_v17 = vrot.slane %v1077_v8, 2 }
  0xb9   : > { %v462_v18 = vrot.slane %v449_v9, 1  ;;  %v524_v40 = vsel %vm492_vm4, %v522_v44, %v523_v46  ;;  %v555_v9 = vmul.f32 %v550_v24, %v1031_v45 }
  0xba   : > { %336 = vrot.lane.b32.xlu2 %v326_v50, %s889_s10  ;;  %361 = vrot.lane.b32.xlu1 %v353_v51, %s890_s20  ;;  %v421_v25 = vsel %vm386_vm3, %v419_v16, %v420_v13  ;;  %v527_v33 = vsel %vm492_vm4, %v525_v21, %v526_v17  ;;  %v782_v21 = vld [vmem:[%s1207_s3] ss:$0 sm:$0xff] }
  0xbb   : > { %v568_v11 = vrot.slane %v555_v9, 2 }
  0xbc   : > { %v1070_v6 = vld [vmem:[#allocation2 + $0x20] sm:$0x3] }
  0xbd   : > { %v377_v12 = vld [vmem:[#allocation2 + $0x20] sm:$0x1]  ;;  %v488_v15 = vmul.f32 %v785_v38, %v1070_v6  ;;  %v459_v38 = vrot.slane %v448_v23, 1  ;;  %v397_v39 = vld [vmem:[#allocation2 + $0x28] sm:$0x1]  ;;  %v514_v61 = vmul.f32 %v1055_v60, %v1070_v6  ;;  %v556_v10 = vmul.f32 %v550_v24, %v1070_v6 }
  0xbe   : > { %v382_v14 = vmul.f32 %v784_v34, %v377_v12  ;;  %v463_v34 = vsel %vm386_vm3, %v461_v22, %v462_v18  ;;  %v451_v48 = vmul.f32 %v1059_v1, %v397_v39  ;;  %v409_v50 = vmul.f32 %v1029_v43, %v397_v39  ;;  %v503_v56 = vld [vmem:[#allocation2 + $0x28] sm:$0x3] }
  0xbf   : > { %v496_v20 = vrot.slane %v488_v15, 2  ;;  %v460_v47 = vsel %vm386_vm3, %v458_v37, %v459_v38  ;;  %v408_v51 = vmul.f32 %v1029_v43, %v377_v12  ;;  %v515_v3 = vmul.f32 %v1055_v60, %v503_v56 }
  0xc0   : > { %365 = vrot.lane.b32.xlu0 %v355_v0, %s890_s20  ;;  %v390_v19 = vrot.slane %v382_v14, 1  ;;  %v466_v52 = vrot.slane %v451_v48, 1  ;;  %v424_v53 = vrot.slane %v409_v50, 1  ;;  %v450_v0 = vmul.f32 %v1059_v1, %v377_v12 }
  0xc1   : > { %v1098_v29 = vsel %vm492_vm4, %v494_v58, %v496_v20  ;;  %v422_v54 = vrot.slane %v408_v51, 1  ;;  %v557_v60 = vmul.f32 %v550_v24, %v503_v56  ;;  %v567_v14 = vrot.slane %v553_v55, 2 }
  0xc2   : > { %426 = vrot.lane.b32.xlu2 %v418_v7, %s889_s10  ;;  %367 = vrot.lane.b32.xlu1 %v356_v4, %s890_s20  ;;  %v1095_v27 = vsel %vm386_vm3, %v388_v49, %v390_v19  ;;  %v566_v49 = vsel %vm492_vm4, %v564_v41, %v565_v42  ;;  %v467_v58 = vsel %vm386_vm3, %v462_v18, %v466_v52  ;;  %v528_v4 = vrot.slane %v514_v61, 2  ;;  %v783_v18 = vld [vmem:[%s1206_s2] ss:$0 sm:$0xff] }
  0xc3   : > { %v425_v63 = vsel %vm386_vm3, %v420_v13, %v424_v53  ;;  %v423_v43 = vsel %vm386_vm3, %v417_v62, %v422_v54  ;;  %v464_v5 = vrot.slane %v450_v0, 1  ;;  %v530_v7 = vrot.slane %v515_v3, 2 }
  0xc4   : > { %v529_v8 = vsel %vm492_vm4, %v523_v46, %v528_v4  ;;  %v572_v12 = vrot.slane %v557_v60, 2  ;;  %v570_v13 = vrot.slane %v556_v10, 2  ;;  %v569_v45 = vsel %vm492_vm4, %v567_v14, %v568_v11 }
  0xc5   : > { %v465_v62 = vsel %vm386_vm3, %v459_v38, %v464_v5  ;;  %v531_v1 = vsel %vm492_vm4, %v526_v17, %v530_v7  ;;  %v312_v22 = vmul.f32 %v783_v18, %v1007_v28 }
  0xc6   : > { %v573_v2 = vsel %vm492_vm4, %v568_v11, %v572_v12  ;;  %v571_v15 = vsel %vm492_vm4, %v565_v42, %v570_v13 }
  0xc7   : > { %v314_v24 = vadd.f32 %v782_v21, %v312_v22 }
  0xc8   : > { %428 = vrot.lane.b32.xlu0 %v421_v25, %s889_s10 }
  0xca   : > { %534 = vrot.lane.b32.xlu2 %v527_v33, %s889_s10  ;;  %470 = vrot.lane.b32.xlu1 %v463_v34, %s890_s20  ;;  %v313_v34 = vmul.f32 %v783_v18, %v1012_v31 }
  0xcc   : > { %v315_v38 = vadd.f32 %v782_v21, %v313_v34 }
  0xd0   : > { %468 = vrot.lane.b32.xlu0 %v460_v47, %s890_s20 }
  0xd2   : > { %574 = vrot.lane.b32.xlu2 %v566_v49, %s890_s20  ;;  %532 = vrot.lane.b32.xlu1 %v524_v40, %s889_s10 }
  0xd8   : > { %474 = vrot.lane.b32.xlu0 %v467_v58, %s890_s20 }
  0xda   : > { %432 = vrot.lane.b32.xlu2 %v425_v63, %s889_s10  ;;  %430 = vrot.lane.b32.xlu1 %v423_v43, %s889_s10 }
  0xe0   : > { %536 = vrot.lane.b32.xlu0 %v529_v8, %s889_s10 }
  0xe2   : > { %472 = vrot.lane.b32.xlu2 %v465_v62, %s890_s20  ;;  %538 = vrot.lane.b32.xlu1 %v531_v1, %s889_s10  ;;  %s207_s10 = scalar_lea.vmem [#allocation6], %s686_s5 }
  0xe3   : > { %s603_s11 = sshll.u32 %s207_s10, 4  ;;  %s604_s11 = int_to_ptr.vmem [resolvable:$true] %s603_s11 }
  0xe8   : > { %576 = vrot.lane.b32.xlu0 %v569_v45, %s890_s20 }
  0xea   : > { %580 = vrot.lane.b32.xlu2 %v573_v2, %s890_s20  ;;  %578 = vrot.lane.b32.xlu1 %v571_v15, %s890_s20 }
 0x10c   : > { %v364_v6 = vpop.permute.xlu2 %363 }
 0x114   : > { %v337_v16 = vpop.permute.xlu2 %336 }
 0x11b   : > { %v333_v17 = vpop.permute.xlu0 %332 }
 0x11c   : > { %v427_v20 = vpop.permute.xlu2 %426 }
 0x124   : > { %v335_v19 = vpop.permute.xlu1 %334  ;;  %v535_v35 = vpop.permute.xlu2 %534 }
 0x125   : > { %v341_v23 = vsel %vm340_vm5, %v333_v17, %v335_v19 }
 0x126   : > { %v345_v26 = vadd.f32 %v341_v23, %v314_v24 }
 0x12a   : > { %v339_v25 = vpop.permute.xlu0 %338 }
 0x12b   : > { %v342_v37 = vsel %vm340_vm5, %v337_v16, %v339_v25 }
 0x12c   : > { %v362_v30 = vpop.permute.xlu1 %361  ;;  %v346_v28 = vadd.f32 %v342_v37, %v315_v38  ;;  %v575_v47 = vpop.permute.xlu2 %574 }
 0x12d   : > { %v370_v32 = vsel %vm369_vm6, %v362_v30, %v364_v6 }
 0x12e   : > { %v374_v33 = vadd.f32 %v370_v32, %v345_v26 }
 0x130   : > { %v394_v36 = vadd.f32 %v1050_v57, %v374_v33 }
 0x132   : > { %v366_v39 = vpop.permute.xlu0 %365 }
 0x134   : > { %v368_v41 = vpop.permute.xlu1 %367  ;;  %v433_v51 = vpop.permute.xlu2 %432 }
 0x135   : > { %v371_v42 = vsel %vm369_vm6, %v366_v39, %v368_v41 }
 0x136   : > { %v375_v44 = vadd.f32 %v371_v42, %v346_v28 }
 0x138   : > { %v395_v46 = vadd.f32 %v1095_v27, %v375_v44 }
 0x13a   : > { %v429_v48 = vpop.permute.xlu0 %428 }
 0x13b   : > { %v434_v31 = vsel %vm340_vm5, %v427_v20, %v429_v48 }
 0x13c   : > { %v471_v49 = vpop.permute.xlu1 %470  ;;  %v438_v40 = vadd.f32 %v434_v31, %v394_v36  ;;  %v473_v61 = vpop.permute.xlu2 %472 }
 0x142   : > { %v469_v50 = vpop.permute.xlu0 %468 }
 0x143   : > { %v476_v57 = vsel %vm369_vm6, %v469_v50, %v471_v49 }
 0x144   : > { %v533_v52 = vpop.permute.xlu1 %532  ;;  %v480_v53 = vadd.f32 %v476_v57, %v438_v40 }
 0x146   : > { %v500_v54 = vadd.f32 %v1053_v59, %v480_v53  ;;  %v540_v59 = vsel %vm340_vm5, %v533_v52, %v535_v35 }
 0x148   : > { %v544_v9 = vadd.f32 %v540_v59, %v500_v54 }
 0x14a   : > { %v475_v56 = vpop.permute.xlu0 %474 }
 0x14b   : > { %v477_v43 = vsel %vm369_vm6, %v473_v61, %v475_v56 }
 0x14c   : > { %v431_v58 = vpop.permute.xlu1 %430 }
 0x14d   : > { %v435_v27 = vsel %vm340_vm5, %v431_v58, %v433_v51 }
 0x14e   : > { %v439_v63 = vadd.f32 %v435_v27, %v395_v46 }
 0x150   : > { %v481_v0 = vadd.f32 %v477_v43, %v439_v63 }
 0x152   : > { %v501_v3 = vadd.f32 %v1098_v29, %v481_v0  ;;  %v537_v4 = vpop.permute.xlu0 %536  ;;  %v581_v29 = vpop.permute.xlu2 %580 }
 0x154   : > { %v539_v5 = vpop.permute.xlu1 %538 }
 0x155   : > { %v541_v7 = vsel %vm340_vm5, %v537_v4, %v539_v5 }
 0x156   : > { %v545_v62 = vadd.f32 %v541_v7, %v501_v3 }
 0x15a   : > { %v577_v8 = vpop.permute.xlu0 %576 }
 0x15b   : > { %v582_v55 = vsel %vm369_vm6, %v575_v47, %v577_v8 }
 0x15c   : > { %v579_v1 = vpop.permute.xlu1 %578  ;;  %v586_v60 = vadd.f32 %v582_v55, %v544_v9 }
 0x15d   : > { %v583_v10 = vsel %vm369_vm6, %v579_v1, %v581_v29 }
 0x15e   : > { %v587_v11 = vadd.f32 %v583_v10, %v545_v62  ;;  %588 = vst [vmem:[%s207_s10] sm:$0xff] %v586_v60 }
 0x160   : > { %589 = vst [vmem:[%s207_s10 + $0x8] sm:$0xff] %v587_v11 }
 0x161   : > { %843 = shalt.err (!%p840_p8)
}
 0x162   : > { %s891_s30 = smov 128  }
 0x163   : > { %723 = dma.vmem_to_hbm [thread:$0]  (%p955_p5), %s604_s11, 256, %s606_s12, %s591_s19, %s891_s30, %s891_s30, %s887_s28  }
 0x164 PF: > { %p735_p9 = scmp.ge.s32.totalorder %s882_s18, 2  ;;  %s620_s5 = sand.u32 1, %s870_s15  }
 0x165   : > { %s621_s6 = scalar_lea.sflag [#allocation5], %s620_s5 }
 0x166   : > { %p730_p10 = pnand %p735_p9, %p959_p6 }
 0x168   : > { %p731_p11 = pneg %p730_p10 }
 0x16a   : > { %865 = dma.done.wait (%p731_p11), %s621_s6, 256  }
 0x16b   : > { %867 = vsyncadd (%p731_p11), %s621_s6, 4294967040  ;;  %p15_p12 = scmp.ge.s32.totalorder %s942_s21, 4   ;;  %s1211_s15 = smov %s874_s16 }
 0x16c   : > { %s1212_s16 = smov %s878_s17  ;;  %s1213_s17 = smov %s953_s24 }
 0x16d   : > { %s1214_s18 = smov %s942_s21  ;;  %17 = sbr.rel (!%p15_p12) target bundleno = 4 (0x4), region = 76 }
 0x172   :  { %627 = vsyncpa [#allocation4], 1 }
 0x173   :  { %629 = vsyncpa [#allocation4 + $0x1], 1 }
 0x174   :  { %630 = vsyncpa [#allocation5], 1 }
 0x175   :  { %632 = vsyncpa [#allocation5 + $0x1], 1 }

</bundles_post_ra>
